<compile_context>
chip_gen: v5e
topology: v5e:2x2
jax: 0.10.0
libtpu: 0.0.40
codegen_flags: <defaults>
</compile_context>

<pallas_src>
import functools

import jax
import jax.numpy as jnp
from jax.experimental import pallas as pl
from jax.experimental.pallas import tpu as pltpu


def _round_up(n, m):
    return ((n + m - 1) // m) * m


def _make_mlp_kernel(reduce_fc4):
    def kernel(x_ref,
               w1_ref, b1_ref,
               w2_ref, b2_ref,
               w3_ref, b3_ref,
               w4_ref, b4_ref,
               o_ref):
        # fc1 + ReLU   (dropout = identity in eval mode)
        h = jnp.dot(x_ref[...], w1_ref[...], preferred_element_type=jnp.float32)
        h = jnp.maximum(h + b1_ref[...], 0.0)
        # fc2 + ReLU
        h = jnp.dot(h.astype(jnp.bfloat16), w2_ref[...],
                    preferred_element_type=jnp.float32)
        h = jnp.maximum(h + b2_ref[...], 0.0)
        # fc3 + ReLU
        h = jnp.dot(h.astype(jnp.bfloat16), w3_ref[...],
                    preferred_element_type=jnp.float32)
        h = jnp.maximum(h + b3_ref[...], 0.0)

        if reduce_fc4:
            # fc4 with a single output unit: VPU multiply + lane reduction
            # (XLU) instead of an N=1 MXU matmul; broadcast across the
            # 128-lane output slab so the store is a full, unmasked vst.
            # w4_ref: (1, OH) f32 row, b4_ref: (1, 1) f32.
            y = jnp.sum(h * w4_ref[...], axis=-1, keepdims=True) + b4_ref[...]
            y = jax.nn.sigmoid(y)
            o_ref[...] = jnp.broadcast_to(y, o_ref.shape).astype(o_ref.dtype)
        else:
            # fc4 + Sigmoid on a lane-padded (multiple-of-128) output.
            y = jnp.dot(h.astype(jnp.bfloat16), w4_ref[...],
                        preferred_element_type=jnp.float32)
            y = jax.nn.sigmoid(y + b4_ref[...])
            o_ref[...] = y.astype(o_ref.dtype)

    return kernel


def mlp_custom_forward(x, params, *, batch_tile=None):
    """params: dict of (w1,b1,...,w4,b4); w_i is (in, out); b_i is (1, out)."""
    B, F = x.shape
    if batch_tile is None:
        # 512-row tiles give >85% of HBM roofline on mem-bound tiling while
        # keeping the per-tile VMEM footprint v7x-safe; small batches get a
        # single padded tile.
        batch_tile = min(512, _round_up(max(B, 1), 8))
    assert batch_tile % 8 == 0, "batch_tile must be a multiple of 8 (sublanes)"
    B_pad = _round_up(B, batch_tile)

    # bf16 MXU inputs; f32 biases (elementwise math stays f32 for v5e).
    w1 = params["w1"].astype(jnp.bfloat16)
    w2 = params["w2"].astype(jnp.bfloat16)
    w3 = params["w3"].astype(jnp.bfloat16)
    b1 = params["b1"].astype(jnp.float32)
    b2 = params["b2"].astype(jnp.float32)
    b3 = params["b3"].astype(jnp.float32)

    out_size = params["w4"].shape[1]
    reduce_fc4 = (out_size == 1)
    if reduce_fc4:
        out_pad = 128
        w4 = params["w4"].astype(jnp.float32).T          # (1, OH) row, f32 (VPU)
        b4 = params["b4"].astype(jnp.float32)            # (1, 1)
    else:
        out_pad = _round_up(out_size, 128)
        oh = params["w4"].shape[0]
        w4 = jnp.zeros((oh, out_pad), jnp.bfloat16)
        w4 = w4.at[:, :out_size].set(params["w4"].astype(jnp.bfloat16))
        b4 = jnp.zeros((1, out_pad), jnp.float32)
        b4 = b4.at[:, :out_size].set(params["b4"].astype(jnp.float32))

    x_p = x.astype(jnp.bfloat16)
    if B_pad != B:
        x_p = jnp.pad(x_p, ((0, B_pad - B), (0, 0)))

    def full_spec(shape):
        # weight / bias: whole array resident, same block every grid step
        return pl.BlockSpec(shape, lambda i: (0, 0))

    grid = (B_pad // batch_tile,)

    out = pl.pallas_call(
        _make_mlp_kernel(reduce_fc4),
        out_shape=jax.ShapeDtypeStruct((B_pad, out_pad), jnp.float32),
        grid_spec=pltpu.PrefetchScalarGridSpec(
            num_scalar_prefetch=0,
            grid=grid,
            in_specs=[
                pl.BlockSpec((batch_tile, F), lambda i: (i, 0)),
                full_spec(w1.shape), full_spec(b1.shape),
                full_spec(w2.shape), full_spec(b2.shape),
                full_spec(w3.shape), full_spec(b3.shape),
                full_spec(w4.shape), full_spec(b4.shape),
            ],
            out_specs=pl.BlockSpec((batch_tile, out_pad), lambda i: (i, 0)),
        ),
        compiler_params=pltpu.CompilerParams(
            dimension_semantics=("parallel",),
            vmem_limit_bytes=32 * 1024 * 1024,
        ),
    )(x_p, w1, b1, w2, b2, w3, b3, w4, b4)

    return out[:B, :out_size]


def init_params(key, input_size, first_hidden, other_hidden, output_size):
    """Deterministic synthetic init (PyTorch-like uniform fan-in scaling)."""
    ks = jax.random.split(key, 8)

    def linear(kw, kb, fan_in, fan_out):
        bound = 1.0 / jnp.sqrt(fan_in)
        w = jax.random.uniform(kw, (fan_in, fan_out), jnp.float32, -bound, bound)
        b = jax.random.uniform(kb, (1, fan_out), jnp.float32, -bound, bound)
        return w, b

    w1, b1 = linear(ks[0], ks[1], input_size, first_hidden)
    w2, b2 = linear(ks[2], ks[3], first_hidden, other_hidden)
    w3, b3 = linear(ks[4], ks[5], other_hidden, other_hidden)
    w4, b4 = linear(ks[6], ks[7], other_hidden, output_size)
    return dict(w1=w1, b1=b1, w2=w2, b2=b2, w3=w3, b3=b3, w4=w4, b4=b4)


def mlp_reference(x, p):
    h = jnp.maximum(x @ p["w1"] + p["b1"], 0.0)
    h = jnp.maximum(h @ p["w2"] + p["b2"], 0.0)
    h = jnp.maximum(h @ p["w3"] + p["b3"], 0.0)
    return jax.nn.sigmoid(h @ p["w4"] + p["b4"])


def _check(key, B, input_size, fh, oh, out_size, batch_tile=None):
    k_x, k_p = jax.random.split(key)
    x = jax.random.normal(k_x, (B, input_size), jnp.float32)
    params = init_params(k_p, input_size, fh, oh, out_size)

    out = mlp_custom_forward(x, params, batch_tile=batch_tile)
    out = jax.block_until_ready(out)
    ref = mlp_reference(x, params)

    assert out.shape == (B, out_size), (out.shape, (B, out_size))
    # bf16 matmul inputs (f32 accumulation) -> loosened tolerance vs f32 ref.
    assert jnp.allclose(out, ref, atol=2e-2), float(jnp.max(jnp.abs(out - ref)))


if __name__ == "__main__":
    key = jax.random.PRNGKey(0)
    k1, k2, k3 = jax.random.split(key, 3)

    # Module-implied shapes: input_size=32, first_hidden=64,
    # other_hidden=128 (default), output_size=1 (default).
    INPUT, FH, OH = 32, 64, 128

    # Small module-scale batch (single padded tile; output_size=1 VPU path).
    _check(k1, B=8, input_size=INPUT, fh=FH, oh=OH, out_size=1)

    # Larger batch: exercises grid=(2,) with 512-row tiles (pipelining /
    # megacore-parallel axis).
    _check(k2, B=1024, input_size=INPUT, fh=FH, oh=OH, out_size=1)

    # Multi-output head: exercises the lane-padded fc4 matmul path.
    _check(k3, B=64, input_size=INPUT, fh=FH, oh=OH, out_size=4)

    print("KERNEL_OK")
</pallas_src>

<mosaic_0001>
module attributes {stable_mosaic.version = 11 : i64} {
  func.func @kernel(%arg0: i32, %arg1: memref<8x32xbf16, #tpu.memory_space<vmem>>, %arg2: memref<32x64xbf16, #tpu.memory_space<vmem>>, %arg3: memref<1x64xf32, #tpu.memory_space<vmem>>, %arg4: memref<64x128xbf16, #tpu.memory_space<vmem>>, %arg5: memref<1x128xf32, #tpu.memory_space<vmem>>, %arg6: memref<128x128xbf16, #tpu.memory_space<vmem>>, %arg7: memref<1x128xf32, #tpu.memory_space<vmem>>, %arg8: memref<1x128xf32, #tpu.memory_space<vmem>>, %arg9: memref<1x1xf32, #tpu.memory_space<vmem>>, %arg10: memref<8x128xf32, #tpu.memory_space<vmem>>) attributes {dimension_semantics = [#tpu.dimension_semantics<parallel>], iteration_bounds = array<i64: 1>, scalar_prefetch = 0 : i64, scratch_operands = 0 : i64, tpu.core_type = #tpu.core_type<tc>, window_params = [{transform_indices = @transform_0, window_bounds = array<i64: 8, 32>}, {pipeline_mode = #tpu.pipeline_mode<synchronous>, transform_indices = @transform_1, window_bounds = array<i64: 32, 64>}, {pipeline_mode = #tpu.pipeline_mode<synchronous>, transform_indices = @transform_2, window_bounds = array<i64: 1, 64>}, {pipeline_mode = #tpu.pipeline_mode<synchronous>, transform_indices = @transform_3, window_bounds = array<i64: 64, 128>}, {pipeline_mode = #tpu.pipeline_mode<synchronous>, transform_indices = @transform_4, window_bounds = array<i64: 1, 128>}, {pipeline_mode = #tpu.pipeline_mode<synchronous>, transform_indices = @transform_5, window_bounds = array<i64: 128, 128>}, {pipeline_mode = #tpu.pipeline_mode<synchronous>, transform_indices = @transform_6, window_bounds = array<i64: 1, 128>}, {pipeline_mode = #tpu.pipeline_mode<synchronous>, transform_indices = @transform_7, window_bounds = array<i64: 1, 128>}, {pipeline_mode = #tpu.pipeline_mode<synchronous>, transform_indices = @transform_8, window_bounds = array<i64: 1, 1>}, {transform_indices = @transform_9, window_bounds = array<i64: 8, 128>}]} {
    %c0 = arith.constant 0 : index
    %c0_0 = arith.constant 0 : index
    %0 = vector.load %arg1[%c0, %c0_0] : memref<8x32xbf16, #tpu.memory_space<vmem>>, vector<8x32xbf16>
    %c0_1 = arith.constant 0 : index
    %c0_2 = arith.constant 0 : index
    %1 = vector.load %arg2[%c0_1, %c0_2] : memref<32x64xbf16, #tpu.memory_space<vmem>>, vector<32x64xbf16>
    %cst = arith.constant dense<0.000000e+00> : vector<8x64xf32>
    %2 = tpu.matmul %0, %1, %cst {dimension_numbers = #tpu.dot_dimension_numbers<[1], [0], [0], [1], [0, 0, 1, 1], [], []>} : vector<8x32xbf16>, vector<32x64xbf16>, vector<8x64xf32> -> vector<8x64xf32>
    %c0_3 = arith.constant 0 : index
    %c0_4 = arith.constant 0 : index
    %3 = vector.load %arg3[%c0_3, %c0_4] : memref<1x64xf32, #tpu.memory_space<vmem>>, vector<1x64xf32>
    %4 = vector.broadcast %3 : vector<1x64xf32> to vector<8x64xf32>
    %5 = arith.addf %2, %4 : vector<8x64xf32>
    %cst_5 = arith.constant 0.000000e+00 : f32
    %6 = vector.broadcast %cst_5 : f32 to vector<8x64xf32>
    %7 = arith.maximumf %5, %6 : vector<8x64xf32>
    %8 = arith.truncf %7 : vector<8x64xf32> to vector<8x64xbf16>
    %c0_6 = arith.constant 0 : index
    %c0_7 = arith.constant 0 : index
    %9 = vector.load %arg4[%c0_6, %c0_7] : memref<64x128xbf16, #tpu.memory_space<vmem>>, vector<64x128xbf16>
    %cst_8 = arith.constant dense<0.000000e+00> : vector<8x128xf32>
    %10 = tpu.matmul %8, %9, %cst_8 {dimension_numbers = #tpu.dot_dimension_numbers<[1], [0], [0], [1], [0, 0, 1, 1], [], []>} : vector<8x64xbf16>, vector<64x128xbf16>, vector<8x128xf32> -> vector<8x128xf32>
    %c0_9 = arith.constant 0 : index
    %c0_10 = arith.constant 0 : index
    %11 = vector.load %arg5[%c0_9, %c0_10] : memref<1x128xf32, #tpu.memory_space<vmem>>, vector<1x128xf32>
    %12 = vector.broadcast %11 : vector<1x128xf32> to vector<8x128xf32>
    %13 = arith.addf %10, %12 : vector<8x128xf32>
    %cst_11 = arith.constant 0.000000e+00 : f32
    %14 = vector.broadcast %cst_11 : f32 to vector<8x128xf32>
    %15 = arith.maximumf %13, %14 : vector<8x128xf32>
    %16 = arith.truncf %15 : vector<8x128xf32> to vector<8x128xbf16>
    %c0_12 = arith.constant 0 : index
    %c0_13 = arith.constant 0 : index
    %17 = vector.load %arg6[%c0_12, %c0_13] : memref<128x128xbf16, #tpu.memory_space<vmem>>, vector<128x128xbf16>
    %cst_14 = arith.constant dense<0.000000e+00> : vector<8x128xf32>
    %18 = tpu.matmul %16, %17, %cst_14 {dimension_numbers = #tpu.dot_dimension_numbers<[1], [0], [0], [1], [0, 0, 1, 1], [], []>} : vector<8x128xbf16>, vector<128x128xbf16>, vector<8x128xf32> -> vector<8x128xf32>
    %c0_15 = arith.constant 0 : index
    %c0_16 = arith.constant 0 : index
    %19 = vector.load %arg7[%c0_15, %c0_16] : memref<1x128xf32, #tpu.memory_space<vmem>>, vector<1x128xf32>
    %20 = vector.broadcast %19 : vector<1x128xf32> to vector<8x128xf32>
    %21 = arith.addf %18, %20 : vector<8x128xf32>
    %cst_17 = arith.constant 0.000000e+00 : f32
    %22 = vector.broadcast %cst_17 : f32 to vector<8x128xf32>
    %23 = arith.maximumf %21, %22 : vector<8x128xf32>
    %c0_18 = arith.constant 0 : index
    %c0_19 = arith.constant 0 : index
    %24 = vector.load %arg8[%c0_18, %c0_19] : memref<1x128xf32, #tpu.memory_space<vmem>>, vector<1x128xf32>
    %25 = vector.broadcast %24 : vector<1x128xf32> to vector<8x128xf32>
    %26 = arith.mulf %23, %25 : vector<8x128xf32>
    %cst_20 = arith.constant dense<0.000000e+00> : vector<8xf32>
    %27 = vector.multi_reduction <add>, %26, %cst_20 [1] : vector<8x128xf32> to vector<8xf32>
    %28 = vector.shape_cast %27 : vector<8xf32> to vector<8x1xf32>
    %c0_21 = arith.constant 0 : index
    %c0_22 = arith.constant 0 : index
    %29 = vector.load %arg9[%c0_21, %c0_22] : memref<1x1xf32, #tpu.memory_space<vmem>>, vector<1x1xf32>
    %30 = vector.broadcast %29 : vector<1x1xf32> to vector<8x1xf32>
    %31 = arith.addf %28, %30 : vector<8x1xf32>
    %32 = arith.negf %31 : vector<8x1xf32>
    %33 = math.exp %32 : vector<8x1xf32>
    %cst_23 = arith.constant 1.000000e+00 : f32
    %34 = vector.broadcast %cst_23 : f32 to vector<8x1xf32>
    %35 = arith.addf %34, %33 : vector<8x1xf32>
    %36 = arith.divf %34, %35 : vector<8x1xf32>
    %37 = vector.shape_cast %36 : vector<8x1xf32> to vector<8x1xf32>
    %38 = vector.broadcast %37 : vector<8x1xf32> to vector<8x128xf32>
    %c0_24 = arith.constant 0 : index
    %c0_25 = arith.constant 0 : index
    %39 = vector.load %arg10[%c0_24, %c0_25] : memref<8x128xf32, #tpu.memory_space<vmem>>, vector<8x128xf32>
    tpu.vector_store %arg10[%c0_24, %c0_25], %38 {strides = array<i32>} : memref<8x128xf32, #tpu.memory_space<vmem>>, vector<8x128xf32>,
    return
  }
  func.func @transform_0(%arg0: i32) -> (i32, i32) {
    %c0_i32 = arith.constant 0 : i32
    %c0_i32_0 = arith.constant 0 : i32
    return %arg0, %c0_i32 : i32, i32
  }
  func.func @transform_1(%arg0: i32) -> (i32, i32) {
    %c0_i32 = arith.constant 0 : i32
    %c0_i32_0 = arith.constant 0 : i32
    %c0_i32_1 = arith.constant 0 : i32
    return %c0_i32, %c0_i32_0 : i32, i32
  }
  func.func @transform_2(%arg0: i32) -> (i32, i32) {
    %c0_i32 = arith.constant 0 : i32
    %c0_i32_0 = arith.constant 0 : i32
    %c0_i32_1 = arith.constant 0 : i32
    return %c0_i32, %c0_i32_0 : i32, i32
  }
  func.func @transform_3(%arg0: i32) -> (i32, i32) {
    %c0_i32 = arith.constant 0 : i32
    %c0_i32_0 = arith.constant 0 : i32
    %c0_i32_1 = arith.constant 0 : i32
    return %c0_i32, %c0_i32_0 : i32, i32
  }
  func.func @transform_4(%arg0: i32) -> (i32, i32) {
    %c0_i32 = arith.constant 0 : i32
    %c0_i32_0 = arith.constant 0 : i32
    %c0_i32_1 = arith.constant 0 : i32
    return %c0_i32, %c0_i32_0 : i32, i32
  }
  func.func @transform_5(%arg0: i32) -> (i32, i32) {
    %c0_i32 = arith.constant 0 : i32
    %c0_i32_0 = arith.constant 0 : i32
    %c0_i32_1 = arith.constant 0 : i32
    return %c0_i32, %c0_i32_0 : i32, i32
  }
  func.func @transform_6(%arg0: i32) -> (i32, i32) {
    %c0_i32 = arith.constant 0 : i32
    %c0_i32_0 = arith.constant 0 : i32
    %c0_i32_1 = arith.constant 0 : i32
    return %c0_i32, %c0_i32_0 : i32, i32
  }
  func.func @transform_7(%arg0: i32) -> (i32, i32) {
    %c0_i32 = arith.constant 0 : i32
    %c0_i32_0 = arith.constant 0 : i32
    %c0_i32_1 = arith.constant 0 : i32
    return %c0_i32, %c0_i32_0 : i32, i32
  }
  func.func @transform_8(%arg0: i32) -> (i32, i32) {
    %c0_i32 = arith.constant 0 : i32
    %c0_i32_0 = arith.constant 0 : i32
    %c0_i32_1 = arith.constant 0 : i32
    return %c0_i32, %c0_i32_0 : i32, i32
  }
  func.func @transform_9(%arg0: i32) -> (i32, i32) {
    %c0_i32 = arith.constant 0 : i32
    %c0_i32_0 = arith.constant 0 : i32
    return %arg0, %c0_i32 : i32, i32
  }
}

</mosaic_0001>

<bundles_post_ra>
// kernel: tpu_custom_call.1
= control target key start
LH: loop header
LB: loop body
LE: loop exit
PB: predicated region body
PF: predicated region fallthrough
CT: control target
= control target key end

     0   :  { %s637_s0 = inlined_call_operand.hbm [shape: bf16[8,32], index: 0, kind: input, shape index: {}]   ;;  %s638_s1 = inlined_call_operand.hbm [shape: bf16[32,64], index: 1, kind: input, shape index: {}]   ;;  %s639_s2 = inlined_call_operand.vmem [shape: f32[1,64], index: 2, kind: input, shape index: {}]   ;;  %s640_s3 = inlined_call_operand.hbm [shape: bf16[64,128], index: 3, kind: input, shape index: {}]   ;;  %s641_s4 = inlined_call_operand.vmem [shape: f32[1,128], index: 4, kind: input, shape index: {}]   ;;  %s642_s5 = inlined_call_operand.hbm [shape: bf16[128,128], index: 5, kind: input, shape index: {}]   ;;  %s643_s6 = inlined_call_operand.vmem [shape: f32[1,128], index: 6, kind: input, shape index: {}]   ;;  %s644_s7 = inlined_call_operand.vmem [shape: f32[1,128], index: 7, kind: input, shape index: {}]   ;;  %s645_s8 = inlined_call_operand.<no memory space> [shape: f32[1,1], index: 8, kind: input, shape index: {}]   ;;  %s646_s9 = inlined_call_operand.hbm [shape: f32[8,128], index: 9, kind: output, shape index: {}]  }
   0x1   :  { %v14_v0 = vstv %s645_s8 }
   0x2   :  { %15 = vst [vmem:[#allocation2] sm:$0x1] %v14_v0 }
   0x3   :  { %16 = vsyncpa [#allocation4], 0 }
   0x4   :  { %17 = vsyncpa [#allocation7], 0 }
   0x5   :  { %18 = vsyncpa [#allocation10], 0  ;;  %s35_s13 = sshll.u32 %s638_s1, 4  ;;  %s36_s13 = int_to_ptr.hbm [resolvable:$true] %s35_s13 }
   0x6   :  { %19 = vsyncpa [#allocation5], 0  ;;  %s549_s14 = smov [#allocation6]   ;;  %s25_s18 = sshll.u32 %s637_s0, 4  ;;  %s26_s18 = int_to_ptr.hbm [resolvable:$true] %s25_s18 }
   0x7   :  { %s37_s15 = sshll.u32 %s549_s14, 4  ;;  %s550_s19 = smov 64   ;;  %s38_s15 = int_to_ptr.vmem [resolvable:$true] %s37_s15 }
   0x8   :  { %s551_s20 = smov 4   ;;  %s552_s8 = smov [#allocation3]  }
   0x9   :  { %43 = dma.hbm_to_vmem [thread:$0]  %s36_s13, 256, %s38_s15, [#allocation7], %s550_s19, %s550_s19, %s551_s20  }
   0xa   :  { %s27_s21 = sshll.u32 %s552_s8, 4  ;;  %s50_s24 = sshll.u32 %s640_s3, 4  ;;  %s28_s21 = int_to_ptr.vmem [resolvable:$true] %s27_s21  ;;  %s51_s24 = int_to_ptr.hbm [resolvable:$true] %s50_s24 }
   0xb   :  { %30 = dma.hbm_to_vmem [thread:$0]  %s26_s18, 64, %s28_s21, [#allocation4]  }
   0xc   :  { %s65_s26 = sshll.u32 %s642_s5, 4  ;;  %s553_s27 = smov [#allocation8]   ;;  %s66_s26 = int_to_ptr.hbm [resolvable:$true] %s65_s26 }
   0xd   :  { %s52_s28 = sshll.u32 %s553_s27, 4  ;;  %s554_s0 = smov [#allocation9]   ;;  %s53_s28 = int_to_ptr.vmem [resolvable:$true] %s52_s28 }
   0xe   :  { %58 = dma.hbm_to_vmem [thread:$0]  %s51_s24, 512, %s53_s28, [#allocation7], %s550_s19, %s550_s19, %s551_s20  }
   0xf   :  { %s67_s29 = sshll.u32 %s554_s0, 4  ;;  %s68_s29 = int_to_ptr.vmem [resolvable:$true] %s67_s29 }
  0x10   :  { %73 = dma.hbm_to_vmem [thread:$0]  %s66_s26, 1024, %s68_s29, [#allocation10], %s550_s19, %s550_s19, %s551_s20  }
  0x11   :  { %541 = dma.done.wait [#allocation4], 64  }
  0x12   :  { %542 = vsyncadd [#allocation4], 4294967232 }
  0x13   :  { %543 = dma.done.wait [#allocation7], 768  }
  0x14   :  { %544 = vsyncadd [#allocation7], 4294966528 }
  0x15   :  { %545 = dma.done.wait [#allocation10], 1024  }
  0x16   :  { %546 = vsyncadd [#allocation10], 4294966272  ;;  %v390_v1 = vld [vmem:[#allocation6 + $0x8] sm:$0xff]  ;;  %v389_v3 = vld [vmem:[#allocation6] sm:$0xff]  ;;  %vm118_vm0 = vcmask 261120   ;;  %vm173_vm1 = vcmask 523264  }
  0x17   :  { %v394_v2 = vld [vmem:[#allocation8 + $0x18] sm:$0xff]  ;;  %128 = vmatpush.bf16.msra.mxu0 %v390_v1  ;;  %v393_v4 = vld [vmem:[#allocation8 + $0x10] sm:$0xff]  ;;  %v97_v5 = vld [vmem:[#allocation3] sm:$0xf]  ;;  %v555_v35 = vmov 0   ;;  %s318_s15 = sshll.u32 %s646_s9, 4  ;;  %s319_s15 = int_to_ptr.hbm [resolvable:$true] %s318_s15 }
  0x18   :  { %181 = vmatpush.bf16.msra.mxu1 %v394_v2  ;;  %v392_v6 = vld [vmem:[#allocation8 + $0x8] sm:$0xff]  ;;  %v391_v7 = vld [vmem:[#allocation8] sm:$0xff]  ;;  %v402_v8 = vld [vmem:[#allocation9 + $0x38] sm:$0xff]  ;;  %411 = vset.pattern.permute.xlu0 %v555_v35 }
  0x19   :  { %260 = vmatpush.bf16.msra.mxu2 %v402_v8  ;;  %v401_v9 = vld [vmem:[#allocation9 + $0x30] sm:$0xff]  ;;  %v400_v10 = vld [vmem:[#allocation9 + $0x28] sm:$0xff]  ;;  %v399_v11 = vld [vmem:[#allocation9 + $0x20] sm:$0xff] }
  0x1a   :  { %v398_v12 = vld [vmem:[#allocation9 + $0x18] sm:$0xff]  ;;  %v397_v13 = vld [vmem:[#allocation9 + $0x10] sm:$0xff]  ;;  %v412_v14 = vld [vmem:[%s639_s2] ss:$0 sm:$0xff] }
  0x1b   :  { %129 = vmatpush.bf16.msra.mxu0 %v389_v3  ;;  %v396_v20 = vld [vmem:[#allocation9 + $0x8] sm:$0xff]  ;;  %v395_v21 = vld [vmem:[#allocation9] sm:$0xff] }
  0x1c   :  { %182 = vmatpush.bf16.msra.mxu1 %v393_v4  ;;  %v413_v22 = vld [vmem:[%s641_s4] ss:$0 sm:$0xff]  ;;  %s556_s4 = smov [#allocation11]  }
  0x1d   :  { %261 = vmatpush.bf16.msra.mxu2 %v401_v9  ;;  %v414_v28 = vld [vmem:[%s643_s6] ss:$0 sm:$0xff]  ;;  %s316_s6 = sshll.u32 %s556_s4, 4  ;;  %s317_s6 = int_to_ptr.vmem [resolvable:$true] %s316_s6 }
  0x1e   :  { %338 = vmatmul.msk.bf16.vlgmr.msra.gmra.mxu0 %vm118_vm0, %v97_v5  ;;  %v415_v31 = vld [vmem:[%s644_s7] ss:$0 sm:$0xff] }
  0x1f   :  { %v416_v36 = vld [vmem:[#allocation2] ss:$0 sm:$0xff] }
  0x20   :  { %183 = vmatpush.bf16.msra.mxu1 %v392_v6 }
  0x21   :  { %262 = vmatpush.bf16.msra.mxu2 %v400_v10 }
  0x24   :  { %184 = vmatpush.bf16.msra.mxu1 %v391_v7 }
  0x25   :  { %263 = vmatpush.bf16.msra.mxu2 %v399_v11 }
  0x29   :  { %264 = vmatpush.bf16.msra.mxu2 %v398_v12 }
  0x2d   :  { %265 = vmatpush.bf16.msra.mxu2 %v397_v13 }
  0x31   :  { %266 = vmatpush.bf16.msra.mxu2 %v396_v20 }
  0x35   :  { %267 = vmatpush.bf16.msra.mxu2 %v395_v21 }
  0x9b   :  { %v131_v15 = vpop.f32.mrf.mxu0 }
  0x9c   :  { %v132_v16 = vadd.f32 %v412_v14, %v131_v15 }
  0x9e   :  { %v135_v17 = vmax.f32 %v132_v16, 0.0 }
  0xa0   :  { %v136_v18 = vpack.c.bf16 %v135_v17, %v135_v17 }
  0xa2   :  { %355 = vmatmul.msk.bf16.vlgmr.msra.gmra.mxu1 %vm173_vm1, %v136_v18 }
  0xa3   :  { %v133_v19 = vpop.f32.mrf.mxu0 }
 0x11f   :  { %v186_v23 = vpop.f32.mrf.mxu1 }
 0x120   :  { %v187_v24 = vadd.f32 %v413_v22, %v186_v23 }
 0x122   :  { %v190_v25 = vmax.f32 %v187_v24, 0.0 }
 0x124   :  { %v191_v26 = vpack.c.bf16 %v190_v25, %v190_v25 }
 0x126   :  { %268 = vmatmul.bf16.vlgmr.msra.gmra.mxu2 %v191_v26 }
 0x127   :  { %v188_v27 = vpop.f32.mrf.mxu1 }
 0x1a9   :  { %v269_v29 = vpop.f32.mrf.mxu2 }
 0x1aa   :  { %v270_v30 = vadd.f32 %v414_v28, %v269_v29 }
 0x1ac   :  { %v273_v32 = vmax.f32 %v270_v30, 0.0 }
 0x1ae   :  { %v278_v33 = vmul.f32 %v415_v31, %v273_v32 }
 0x1b0   :  { %279 = vadd.xlane.f32.xlu0 %v278_v33 }
 0x1b1   :  { %v271_v34 = vpop.f32.mrf.mxu2 }
 0x223   :  { %v280_v37 = vpop.xlane.xlu0 %279 }
 0x224   :  { %v285_v38 = vadd.f32 %v416_v36, %v280_v37 }
 0x226   :  { %v388_v39 = vmul.f32 -1.442695, %v285_v38 }
 0x228   :  { %417 = vpow2.f32 %v388_v39 }
 0x22e   :  { %v418_v40 = vpop.eup %417 }
 0x22f   :  { %v289_v41 = vadd.f32 1.0, %v418_v40 }
 0x231   :  { %419 = vrcp.f32 %v289_v41  ;;  %v301_v45 = vand.u32 2147483648, %v289_v41  ;;  %v299_v47 = vand.u32 2147483647, %v289_v41  ;;  %vm295_vm3 = vweird.f32 %v289_v41 }
 0x233   :  { %v302_v49 = vor.u32 1.1754944e-38, %v301_v45  ;;  %vm300_vm5 = vcmp.eq.f32.partialorder %v299_v47, 8.507059e+37 }
 0x237   :  { %v420_v42 = vpop.eup %419 }
 0x238   :  { %v291_v43 = vmul.f32 %v420_v42, %v289_v41  ;;  %vm296_vm2 = vweird.f32 %v420_v42 }
 0x239   :  { %vm297_vm4 = vmor %vm295_vm3, %vm296_vm2 }
 0x23a   :  { %v292_v44 = vsub.f32 1.0, %v291_v43 }
 0x23c   :  { %v293_v46 = vmul.f32 %v420_v42, %v292_v44 }
 0x23e   :  { %v294_v48 = vadd.f32 %v420_v42, %v293_v46 }
 0x240   :  { %v298_v50 = vsel %vm297_vm4, %v420_v42, %v294_v48 }
 0x241   :  { %v303_v51 = vsel %vm300_vm5, %v302_v49, %v298_v50 }
 0x242   :  { %307 = vperm.xlu0 %411, %v303_v51  }
 0x2b4   :  { %v308_v52 = vpop.permute.xlu0 %307 }
 0x2b5   :  { %310 = vst [vmem:[#allocation11] sm:$0xff] %v308_v52 }
 0x2b6   :  { %321 = dma.vmem_to_hbm [thread:$0]  %s317_s6, 128, %s319_s15, [#allocation5]  }
 0x2b7   :  { %547 = dma.done.wait [#allocation5], 128  }
 0x2b8   :  { %548 = vsyncadd [#allocation5], 4294967168 }
 0x2b9   :  { %326 = vsyncpa [#allocation4], 1 }
 0x2ba   :  { %327 = vsyncpa [#allocation7], 1 }
 0x2bb   :  { %328 = vsyncpa [#allocation10], 1 }
 0x2bc   :  { %329 = vsyncpa [#allocation5], 1 }

</bundles_post_ra>
